<compile_context>
chip_gen: v7x
topology: tpu7x:2x2x1
jax: 0.10.0
libtpu: 0.0.40
codegen_flags: <defaults>
</compile_context>

<pallas_src>
import functools

import jax
import jax.numpy as jnp
from jax import lax
from jax.experimental import pallas as pl
from jax.experimental.pallas import tpu as pltpu

EPS = 1e-5


# ----------------------------------------------------------------------------- kernel ---
def _double_conv_kernel(xp_ref, b1_ref, rep1_ref, g1_ref, be1_ref,
                        b2_ref, rep2_ref, g2_ref, be2_ref,
                        o_ref, mid_ref, *, width):
    # xp_ref  : (N, H+2, W*Cin)        bf16  height-padded, width/channel lane-folded input
    # b*_ref  : (3, W*Cin_l, W*Cout_l) bf16  banded conv weights (dx taps + W-padding baked in)
    # rep*_ref: (W*C, W*C)             f32   0/1 channel-replication matrix (i%C == j%C)
    # g*/be*  : (1, W*C)               f32   BN gamma/beta, pre-tiled along the folded lanes
    # o_ref   : (N*H, W*Cout)          f32   lane-dense output slab
    # mid_ref : (N, H+2, W*Cmid)       bf16  scratch: height-padded intermediate activation
    N, Hp, wci = xp_ref.shape
    H = Hp - 2
    NH = N * H
    wcm = b1_ref.shape[2]          # W * Cmid
    inv_m = 1.0 / (NH * width)     # 1 / (N*H*W)

    def bn_relu(yf, rep_ref, g_lane, b_lane):
        # yf: (N*H, W*C) f32.  Two-pass centered batch stats (biased var), all lane-dense.
        col_sum = jnp.sum(yf, axis=0, keepdims=True)                       # (1, W*C)
        mu_lane = jnp.dot(col_sum, rep_ref[...],
                          preferred_element_type=jnp.float32) * inv_m      # per-channel mean,
        d = yf - mu_lane                                                   # replicated per lane
        sq_sum = jnp.sum(d * d, axis=0, keepdims=True)                     # (1, W*C)
        var_lane = jnp.dot(sq_sum, rep_ref[...],
                           preferred_element_type=jnp.float32) * inv_m
        return jnp.maximum(d * lax.rsqrt(var_lane + EPS) * g_lane + b_lane, 0.0)

    # ---- conv1: 3 banded matmuls (bf16 operands, f32 accumulation); bias dropped (cancels
    #      exactly under the following BatchNorm) ----
    y1 = jnp.dot(xp_ref[:, 0:H, :].reshape(NH, wci), b1_ref[0],
                 preferred_element_type=jnp.float32)
    for dy in (1, 2):
        y1 = y1 + jnp.dot(xp_ref[:, dy:dy + H, :].reshape(NH, wci), b1_ref[dy],
                          preferred_element_type=jnp.float32)
    a1 = bn_relu(y1, rep1_ref, g1_ref[...], be1_ref[...])                  # (N*H, W*Cmid)

    # ---- bf16 intermediate: zero the two halo ROWS only (dense 128-lane stores), then one
    #      aligned dense store of the interior ----
    mid_ref[:, 0:1, :] = jnp.zeros((N, 1, wcm), mid_ref.dtype)
    mid_ref[:, Hp - 1:Hp, :] = jnp.zeros((N, 1, wcm), mid_ref.dtype)
    mid_ref[:, 1:1 + H, :] = a1.astype(mid_ref.dtype).reshape(N, H, wcm)

    # ---- conv2: same 3 banded matmuls on the bf16 intermediate ----
    y2 = jnp.dot(mid_ref[:, 0:H, :].reshape(NH, wcm), b2_ref[0],
                 preferred_element_type=jnp.float32)
    for dy in (1, 2):
        y2 = y2 + jnp.dot(mid_ref[:, dy:dy + H, :].reshape(NH, wcm), b2_ref[dy],
                          preferred_element_type=jnp.float32)

    # ---- BN2 + ReLU, stored directly as the lane-dense output slab ----
    o_ref[...] = bn_relu(y2, rep2_ref, g2_ref[...], be2_ref[...])


# ---------------------------------------------------------------------- wrapper helpers ---
def _band_weights(w_hwio, width, dtype):
    """Pack a (3, 3, Cin, Cout) HWIO kernel into 3 banded (width*Cin, width*Cout) matrices.

    band[dy, w_in*Cin + ci, w_out*Cout + co] = w[dy, w_in - w_out + 1, ci, co]
    (zero outside the 3-wide band), so a matmul against a width-folded row slab performs the
    dx taps AND the width zero-padding of a 3x3 'same' convolution in one shot."""
    _, _, cin, cout = w_hwio.shape
    wi = jnp.arange(width)[:, None]
    wo = jnp.arange(width)[None, :]
    dx = wi - wo + 1                                            # (W, W)
    valid = ((dx >= 0) & (dx <= 2)).astype(w_hwio.dtype)
    taps = w_hwio[:, jnp.clip(dx, 0, 2)] * valid[None, :, :, None, None]   # (3, W, W, Cin, Cout)
    band = jnp.transpose(taps, (0, 1, 3, 2, 4)).reshape(3, width * cin, width * cout)
    return band.astype(dtype)


def _channel_rep(width, c, dtype=jnp.float32):
    """(W*C, W*C) 0/1 matrix with rep[i, j] = (i % C == j % C): right-multiplying a folded
    (1, W*C) row by it sums over the W groups per channel and replicates the result back."""
    lane = jnp.arange(width * c)
    return (lane[:, None] % c == lane[None, :] % c).astype(dtype)


def init_params(key, in_ch, out_ch):
    """Deterministic init matching the module shapes (Conv2d kaiming-uniform style,
    BN gamma=1 / beta=0, as at nn.Module construction).  cb1/cb2 exist for module fidelity
    but are not passed to the kernel: a conv bias followed by training-mode BN cancels."""
    k0, k1, k2, k3 = jax.random.split(key, 4)
    b1 = 1.0 / (in_ch * 9) ** 0.5
    b2 = 1.0 / (out_ch * 9) ** 0.5
    return dict(
        w1=jax.random.uniform(k0, (3, 3, in_ch, out_ch), jnp.float32, -b1, b1),
        cb1=jax.random.uniform(k1, (1, out_ch), jnp.float32, -b1, b1),
        g1=jnp.ones((1, out_ch), jnp.float32),
        be1=jnp.zeros((1, out_ch), jnp.float32),
        w2=jax.random.uniform(k2, (3, 3, out_ch, out_ch), jnp.float32, -b2, b2),
        cb2=jax.random.uniform(k3, (1, out_ch), jnp.float32, -b2, b2),
        g2=jnp.ones((1, out_ch), jnp.float32),
        be2=jnp.zeros((1, out_ch), jnp.float32),
    )


@jax.jit
def double_conv_forward(x_nchw, params):
    x = jnp.transpose(x_nchw, (0, 2, 3, 1)).astype(jnp.float32)           # NHWC
    N, H, W, Cin = x.shape
    Cmid = params["w1"].shape[3]
    Cout = params["w2"].shape[3]

    # Height-only zero pad; width padding is folded into the band weights.  Input goes to
    # the kernel in bf16 (MXU consumes bf16 anyway; halves the DMA / VMEM footprint).
    xh = jnp.pad(x, ((0, 0), (1, 1), (0, 0), (0, 0)))
    xp = xh.reshape(N, H + 2, W * Cin).astype(jnp.bfloat16)

    band1 = _band_weights(params["w1"], W, jnp.bfloat16)                   # (3, W*Cin,  W*Cmid)
    band2 = _band_weights(params["w2"], W, jnp.bfloat16)                   # (3, W*Cmid, W*Cout)
    rep1 = _channel_rep(W, Cmid)
    rep2 = _channel_rep(W, Cout)
    g1_lane = jnp.tile(params["g1"], (1, W))                               # (1, W*Cmid)
    be1_lane = jnp.tile(params["be1"], (1, W))
    g2_lane = jnp.tile(params["g2"], (1, W))                               # (1, W*Cout)
    be2_lane = jnp.tile(params["be2"], (1, W))

    flops = 2 * N * H * 3 * ((W * Cin) * (W * Cmid) + (W * Cmid) * (W * Cout))
    bytes_accessed = (xp.size * 2 + band1.size * 2 + band2.size * 2
                      + rep1.size * 4 + rep2.size * 4
                      + 2 * W * (Cmid + Cout) * 4 + N * H * W * Cout * 4)
    cost = pl.CostEstimate(flops=flops, transcendentals=W * (Cmid + Cout),
                           bytes_accessed=bytes_accessed)

    # Generation-aware VMEM limit (v5e/v6e: 128 MiB, v7x: 64 MiB physical).
    try:
        vmem_cap = int(pltpu.get_tpu_info().vmem_capacity_bytes)
    except Exception:
        vmem_cap = 64 * 1024 * 1024
    vmem_limit = max(32 * 1024 * 1024, min(vmem_cap * 3 // 4, 96 * 1024 * 1024))

    vmem = pl.BlockSpec(memory_space=pltpu.MemorySpace.VMEM)
    out = pl.pallas_call(
        functools.partial(_double_conv_kernel, width=W),
        out_shape=jax.ShapeDtypeStruct((N * H, W * Cout), jnp.float32),
        in_specs=[vmem] * 9,
        out_specs=vmem,
        scratch_shapes=[pltpu.VMEM((N, H + 2, W * Cmid), jnp.bfloat16)],
        compiler_params=pltpu.CompilerParams(vmem_limit_bytes=vmem_limit),
        cost_estimate=cost,
    )(xp, band1, rep1, g1_lane, be1_lane, band2, rep2, g2_lane, be2_lane)

    # TODO(synk): BatchNorm running_mean/running_var updates (training-mode side effect) are
    # not modeled; they do not affect the forward output.
    # TODO(synk): for realistic UNet sizes replace this whole-batch-resident band formulation
    # with a gridded BlockSpec pipeline over N / H-blocks (two-phase BN stat accumulation +
    # normalize pass, standard packed im2col weights when W*C >> 128, per-generation block
    # sizes, and "parallel" dimension_semantics so v7x's two TensorCores are both used).
    return jnp.transpose(out.reshape(N, H, W, Cout), (0, 3, 1, 2))         # NCHW


# -------------------------------------------------------------------- pure-JAX reference ---
@jax.jit
def _reference(x_nchw, params):
    """Plain-JAX reference of the PyTorch module (f32 math on bf16-rounded conv inputs to
    match the kernel's MXU operands).  Conv biases are INCLUDED here — they cancel exactly
    under training-mode BN, which the numerical check confirms."""
    def conv_bn_relu(x, w_hwio, cb, gamma, beta):
        xb = x.astype(jnp.bfloat16).astype(jnp.float32)
        wb = w_hwio.astype(jnp.bfloat16).astype(jnp.float32)
        w_oihw = jnp.transpose(wb, (3, 2, 0, 1))
        y = lax.conv_general_dilated(xb, w_oihw, (1, 1), ((1, 1), (1, 1)),
                                     dimension_numbers=("NCHW", "OIHW", "NCHW"))
        y = y + cb.reshape(1, -1, 1, 1)
        mu = jnp.mean(y, axis=(0, 2, 3), keepdims=True)
        var = jnp.mean((y - mu) ** 2, axis=(0, 2, 3), keepdims=True)
        yn = (y - mu) * lax.rsqrt(var + EPS)
        return jnp.maximum(gamma.reshape(1, -1, 1, 1) * yn + beta.reshape(1, -1, 1, 1), 0.0)

    h = conv_bn_relu(x_nchw.astype(jnp.float32), params["w1"], params["cb1"],
                     params["g1"], params["be1"])
    return conv_bn_relu(h, params["w2"], params["cb2"], params["g2"], params["be2"])


if __name__ == "__main__":
    key = jax.random.PRNGKey(0)
    kx, kp = jax.random.split(key)
    in_ch, out_ch = 4, 8
    x = jax.random.normal(kx, (2, in_ch, 16, 16), jnp.float32)             # NCHW input
    params = init_params(kp, in_ch, out_ch)

    y = double_conv_forward(x, params)
    jax.block_until_ready(y)
    assert y.shape == (2, out_ch, 16, 16), y.shape
    assert bool(jnp.all(y >= 0.0))                                         # final ReLU

    y_ref = _reference(x, params)
    max_err = float(jnp.max(jnp.abs(y - y_ref)))
    assert max_err < 2e-2, f"max abs error vs reference: {max_err}"
    print("KERNEL_OK")
</pallas_src>

<mosaic_0001>
module attributes {stable_mosaic.version = 11 : i64} {
  func.func @_double_conv_kernel(%arg0: memref<2x18x64xbf16, #tpu.memory_space<vmem>>, %arg1: memref<3x64x128xbf16, #tpu.memory_space<vmem>>, %arg2: memref<128x128xf32, #tpu.memory_space<vmem>>, %arg3: memref<1x128xf32, #tpu.memory_space<vmem>>, %arg4: memref<1x128xf32, #tpu.memory_space<vmem>>, %arg5: memref<3x128x128xbf16, #tpu.memory_space<vmem>>, %arg6: memref<128x128xf32, #tpu.memory_space<vmem>>, %arg7: memref<1x128xf32, #tpu.memory_space<vmem>>, %arg8: memref<1x128xf32, #tpu.memory_space<vmem>>, %arg9: memref<32x128xf32, #tpu.memory_space<vmem>>, %arg10: memref<2x18x128xbf16, #tpu.memory_space<vmem>>) attributes {dimension_semantics = [], scalar_prefetch = 0 : i64, scratch_operands = 1 : i64, tpu.core_type = #tpu.core_type<tc>} {
    %c0 = arith.constant 0 : index
    %c0_0 = arith.constant 0 : index
    %c0_1 = arith.constant 0 : index
    %0 = vector.load %arg0[%c0, %c0_0, %c0_1] : memref<2x18x64xbf16, #tpu.memory_space<vmem>>, vector<2x16x64xbf16>
    %1 = vector.shape_cast %0 : vector<2x16x64xbf16> to vector<32x64xbf16>
    %c0_2 = arith.constant 0 : index
    %c0_3 = arith.constant 0 : index
    %c0_4 = arith.constant 0 : index
    %2 = vector.load %arg1[%c0_2, %c0_3, %c0_4] : memref<3x64x128xbf16, #tpu.memory_space<vmem>>, vector<1x64x128xbf16>
    %3 = vector.shape_cast %2 : vector<1x64x128xbf16> to vector<64x128xbf16>
    %cst = arith.constant dense<0.000000e+00> : vector<32x128xf32>
    %4 = tpu.matmul %1, %3, %cst {dimension_numbers = #tpu.dot_dimension_numbers<[1], [0], [0], [1], [0, 0, 1, 1], [], []>} : vector<32x64xbf16>, vector<64x128xbf16>, vector<32x128xf32> -> vector<32x128xf32>
    %c0_5 = arith.constant 0 : index
    %c1 = arith.constant 1 : index
    %c0_6 = arith.constant 0 : index
    %5 = vector.load %arg0[%c0_5, %c1, %c0_6] : memref<2x18x64xbf16, #tpu.memory_space<vmem>>, vector<2x16x64xbf16>
    %6 = vector.shape_cast %5 : vector<2x16x64xbf16> to vector<32x64xbf16>
    %c1_7 = arith.constant 1 : index
    %c0_8 = arith.constant 0 : index
    %c0_9 = arith.constant 0 : index
    %7 = vector.load %arg1[%c1_7, %c0_8, %c0_9] : memref<3x64x128xbf16, #tpu.memory_space<vmem>>, vector<1x64x128xbf16>
    %8 = vector.shape_cast %7 : vector<1x64x128xbf16> to vector<64x128xbf16>
    %cst_10 = arith.constant dense<0.000000e+00> : vector<32x128xf32>
    %9 = tpu.matmul %6, %8, %cst_10 {dimension_numbers = #tpu.dot_dimension_numbers<[1], [0], [0], [1], [0, 0, 1, 1], [], []>} : vector<32x64xbf16>, vector<64x128xbf16>, vector<32x128xf32> -> vector<32x128xf32>
    %10 = arith.addf %4, %9 : vector<32x128xf32>
    %c0_11 = arith.constant 0 : index
    %c2 = arith.constant 2 : index
    %c0_12 = arith.constant 0 : index
    %11 = vector.load %arg0[%c0_11, %c2, %c0_12] : memref<2x18x64xbf16, #tpu.memory_space<vmem>>, vector<2x16x64xbf16>
    %12 = vector.shape_cast %11 : vector<2x16x64xbf16> to vector<32x64xbf16>
    %c2_13 = arith.constant 2 : index
    %c0_14 = arith.constant 0 : index
    %c0_15 = arith.constant 0 : index
    %13 = vector.load %arg1[%c2_13, %c0_14, %c0_15] : memref<3x64x128xbf16, #tpu.memory_space<vmem>>, vector<1x64x128xbf16>
    %14 = vector.shape_cast %13 : vector<1x64x128xbf16> to vector<64x128xbf16>
    %cst_16 = arith.constant dense<0.000000e+00> : vector<32x128xf32>
    %15 = tpu.matmul %12, %14, %cst_16 {dimension_numbers = #tpu.dot_dimension_numbers<[1], [0], [0], [1], [0, 0, 1, 1], [], []>} : vector<32x64xbf16>, vector<64x128xbf16>, vector<32x128xf32> -> vector<32x128xf32>
    %16 = arith.addf %10, %15 : vector<32x128xf32>
    %c0_17 = arith.constant 0 : index
    %c0_18 = arith.constant 0 : index
    %17 = vector.load %arg3[%c0_17, %c0_18] : memref<1x128xf32, #tpu.memory_space<vmem>>, vector<1x128xf32>
    %c0_19 = arith.constant 0 : index
    %c0_20 = arith.constant 0 : index
    %18 = vector.load %arg4[%c0_19, %c0_20] : memref<1x128xf32, #tpu.memory_space<vmem>>, vector<1x128xf32>
    %cst_21 = arith.constant dense<0.000000e+00> : vector<128xf32>
    %19 = vector.multi_reduction <add>, %16, %cst_21 [0] : vector<32x128xf32> to vector<128xf32>
    %20 = vector.shape_cast %19 : vector<128xf32> to vector<1x128xf32>
    %c0_22 = arith.constant 0 : index
    %c0_23 = arith.constant 0 : index
    %21 = vector.load %arg2[%c0_22, %c0_23] : memref<128x128xf32, #tpu.memory_space<vmem>>, vector<128x128xf32>
    %cst_24 = arith.constant dense<0.000000e+00> : vector<1x128xf32>
    %22 = tpu.matmul %20, %21, %cst_24 {dimension_numbers = #tpu.dot_dimension_numbers<[1], [0], [0], [1], [0, 0, 1, 1], [], []>} : vector<1x128xf32>, vector<128x128xf32>, vector<1x128xf32> -> vector<1x128xf32>
    %cst_25 = arith.constant 0.001953125 : f32
    %23 = vector.broadcast %cst_25 : f32 to vector<1x128xf32>
    %24 = arith.mulf %22, %23 : vector<1x128xf32>
    %25 = vector.broadcast %24 : vector<1x128xf32> to vector<32x128xf32>
    %26 = arith.subf %16, %25 : vector<32x128xf32>
    %27 = arith.mulf %26, %26 : vector<32x128xf32>
    %cst_26 = arith.constant dense<0.000000e+00> : vector<128xf32>
    %28 = vector.multi_reduction <add>, %27, %cst_26 [0] : vector<32x128xf32> to vector<128xf32>
    %29 = vector.shape_cast %28 : vector<128xf32> to vector<1x128xf32>
    %c0_27 = arith.constant 0 : index
    %c0_28 = arith.constant 0 : index
    %30 = vector.load %arg2[%c0_27, %c0_28] : memref<128x128xf32, #tpu.memory_space<vmem>>, vector<128x128xf32>
    %cst_29 = arith.constant dense<0.000000e+00> : vector<1x128xf32>
    %31 = tpu.matmul %29, %30, %cst_29 {dimension_numbers = #tpu.dot_dimension_numbers<[1], [0], [0], [1], [0, 0, 1, 1], [], []>} : vector<1x128xf32>, vector<128x128xf32>, vector<1x128xf32> -> vector<1x128xf32>
    %cst_30 = arith.constant 0.001953125 : f32
    %32 = vector.broadcast %cst_30 : f32 to vector<1x128xf32>
    %33 = arith.mulf %31, %32 : vector<1x128xf32>
    %cst_31 = arith.constant 9.99999974E-6 : f32
    %34 = vector.broadcast %cst_31 : f32 to vector<1x128xf32>
    %35 = arith.addf %33, %34 : vector<1x128xf32>
    %36 = math.rsqrt %35 : vector<1x128xf32>
    %37 = vector.broadcast %36 : vector<1x128xf32> to vector<32x128xf32>
    %38 = arith.mulf %26, %37 : vector<32x128xf32>
    %39 = vector.broadcast %17 : vector<1x128xf32> to vector<32x128xf32>
    %40 = arith.mulf %38, %39 : vector<32x128xf32>
    %41 = vector.broadcast %18 : vector<1x128xf32> to vector<32x128xf32>
    %42 = arith.addf %40, %41 : vector<32x128xf32>
    %cst_32 = arith.constant 0.000000e+00 : f32
    %43 = vector.broadcast %cst_32 : f32 to vector<32x128xf32>
    %44 = arith.maximumf %42, %43 : vector<32x128xf32>
    %cst_33 = arith.constant 0.000000e+00 : bf16
    %45 = vector.broadcast %cst_33 : bf16 to vector<2x1x128xbf16>
    %c0_34 = arith.constant 0 : index
    %c0_35 = arith.constant 0 : index
    %c0_36 = arith.constant 0 : index
    %46 = vector.load %arg10[%c0_34, %c0_35, %c0_36] : memref<2x18x128xbf16, #tpu.memory_space<vmem>>, vector<2x1x128xbf16>
    tpu.vector_store %arg10[%c0_34, %c0_35, %c0_36], %45 {strides = array<i32>} : memref<2x18x128xbf16, #tpu.memory_space<vmem>>, vector<2x1x128xbf16>,
    %cst_37 = arith.constant 0.000000e+00 : bf16
    %47 = vector.broadcast %cst_37 : bf16 to vector<2x1x128xbf16>
    %c0_38 = arith.constant 0 : index
    %c17 = arith.constant 17 : index
    %c0_39 = arith.constant 0 : index
    %48 = vector.load %arg10[%c0_38, %c17, %c0_39] : memref<2x18x128xbf16, #tpu.memory_space<vmem>>, vector<2x1x128xbf16>
    tpu.vector_store %arg10[%c0_38, %c17, %c0_39], %47 {strides = array<i32>} : memref<2x18x128xbf16, #tpu.memory_space<vmem>>, vector<2x1x128xbf16>,
    %49 = arith.truncf %44 : vector<32x128xf32> to vector<32x128xbf16>
    %50 = vector.shape_cast %49 : vector<32x128xbf16> to vector<2x16x128xbf16>
    %c0_40 = arith.constant 0 : index
    %c1_41 = arith.constant 1 : index
    %c0_42 = arith.constant 0 : index
    %51 = vector.load %arg10[%c0_40, %c1_41, %c0_42] : memref<2x18x128xbf16, #tpu.memory_space<vmem>>, vector<2x16x128xbf16>
    tpu.vector_store %arg10[%c0_40, %c1_41, %c0_42], %50 {strides = array<i32>} : memref<2x18x128xbf16, #tpu.memory_space<vmem>>, vector<2x16x128xbf16>,
    %c0_43 = arith.constant 0 : index
    %c0_44 = arith.constant 0 : index
    %c0_45 = arith.constant 0 : index
    %52 = vector.load %arg10[%c0_43, %c0_44, %c0_45] : memref<2x18x128xbf16, #tpu.memory_space<vmem>>, vector<2x16x128xbf16>
    %53 = vector.shape_cast %52 : vector<2x16x128xbf16> to vector<32x128xbf16>
    %c0_46 = arith.constant 0 : index
    %c0_47 = arith.constant 0 : index
    %c0_48 = arith.constant 0 : index
    %54 = vector.load %arg5[%c0_46, %c0_47, %c0_48] : memref<3x128x128xbf16, #tpu.memory_space<vmem>>, vector<1x128x128xbf16>
    %55 = vector.shape_cast %54 : vector<1x128x128xbf16> to vector<128x128xbf16>
    %cst_49 = arith.constant dense<0.000000e+00> : vector<32x128xf32>
    %56 = tpu.matmul %53, %55, %cst_49 {dimension_numbers = #tpu.dot_dimension_numbers<[1], [0], [0], [1], [0, 0, 1, 1], [], []>} : vector<32x128xbf16>, vector<128x128xbf16>, vector<32x128xf32> -> vector<32x128xf32>
    %c0_50 = arith.constant 0 : index
    %c1_51 = arith.constant 1 : index
    %c0_52 = arith.constant 0 : index
    %57 = vector.load %arg10[%c0_50, %c1_51, %c0_52] : memref<2x18x128xbf16, #tpu.memory_space<vmem>>, vector<2x16x128xbf16>
    %58 = vector.shape_cast %57 : vector<2x16x128xbf16> to vector<32x128xbf16>
    %c1_53 = arith.constant 1 : index
    %c0_54 = arith.constant 0 : index
    %c0_55 = arith.constant 0 : index
    %59 = vector.load %arg5[%c1_53, %c0_54, %c0_55] : memref<3x128x128xbf16, #tpu.memory_space<vmem>>, vector<1x128x128xbf16>
    %60 = vector.shape_cast %59 : vector<1x128x128xbf16> to vector<128x128xbf16>
    %cst_56 = arith.constant dense<0.000000e+00> : vector<32x128xf32>
    %61 = tpu.matmul %58, %60, %cst_56 {dimension_numbers = #tpu.dot_dimension_numbers<[1], [0], [0], [1], [0, 0, 1, 1], [], []>} : vector<32x128xbf16>, vector<128x128xbf16>, vector<32x128xf32> -> vector<32x128xf32>
    %62 = arith.addf %56, %61 : vector<32x128xf32>
    %c0_57 = arith.constant 0 : index
    %c2_58 = arith.constant 2 : index
    %c0_59 = arith.constant 0 : index
    %63 = vector.load %arg10[%c0_57, %c2_58, %c0_59] : memref<2x18x128xbf16, #tpu.memory_space<vmem>>, vector<2x16x128xbf16>
    %64 = vector.shape_cast %63 : vector<2x16x128xbf16> to vector<32x128xbf16>
    %c2_60 = arith.constant 2 : index
    %c0_61 = arith.constant 0 : index
    %c0_62 = arith.constant 0 : index
    %65 = vector.load %arg5[%c2_60, %c0_61, %c0_62] : memref<3x128x128xbf16, #tpu.memory_space<vmem>>, vector<1x128x128xbf16>
    %66 = vector.shape_cast %65 : vector<1x128x128xbf16> to vector<128x128xbf16>
    %cst_63 = arith.constant dense<0.000000e+00> : vector<32x128xf32>
    %67 = tpu.matmul %64, %66, %cst_63 {dimension_numbers = #tpu.dot_dimension_numbers<[1], [0], [0], [1], [0, 0, 1, 1], [], []>} : vector<32x128xbf16>, vector<128x128xbf16>, vector<32x128xf32> -> vector<32x128xf32>
    %68 = arith.addf %62, %67 : vector<32x128xf32>
    %c0_64 = arith.constant 0 : index
    %c0_65 = arith.constant 0 : index
    %69 = vector.load %arg7[%c0_64, %c0_65] : memref<1x128xf32, #tpu.memory_space<vmem>>, vector<1x128xf32>
    %c0_66 = arith.constant 0 : index
    %c0_67 = arith.constant 0 : index
    %70 = vector.load %arg8[%c0_66, %c0_67] : memref<1x128xf32, #tpu.memory_space<vmem>>, vector<1x128xf32>
    %cst_68 = arith.constant dense<0.000000e+00> : vector<128xf32>
    %71 = vector.multi_reduction <add>, %68, %cst_68 [0] : vector<32x128xf32> to vector<128xf32>
    %72 = vector.shape_cast %71 : vector<128xf32> to vector<1x128xf32>
    %c0_69 = arith.constant 0 : index
    %c0_70 = arith.constant 0 : index
    %73 = vector.load %arg6[%c0_69, %c0_70] : memref<128x128xf32, #tpu.memory_space<vmem>>, vector<128x128xf32>
    %cst_71 = arith.constant dense<0.000000e+00> : vector<1x128xf32>
    %74 = tpu.matmul %72, %73, %cst_71 {dimension_numbers = #tpu.dot_dimension_numbers<[1], [0], [0], [1], [0, 0, 1, 1], [], []>} : vector<1x128xf32>, vector<128x128xf32>, vector<1x128xf32> -> vector<1x128xf32>
    %cst_72 = arith.constant 0.001953125 : f32
    %75 = vector.broadcast %cst_72 : f32 to vector<1x128xf32>
    %76 = arith.mulf %74, %75 : vector<1x128xf32>
    %77 = vector.broadcast %76 : vector<1x128xf32> to vector<32x128xf32>
    %78 = arith.subf %68, %77 : vector<32x128xf32>
    %79 = arith.mulf %78, %78 : vector<32x128xf32>
    %cst_73 = arith.constant dense<0.000000e+00> : vector<128xf32>
    %80 = vector.multi_reduction <add>, %79, %cst_73 [0] : vector<32x128xf32> to vector<128xf32>
    %81 = vector.shape_cast %80 : vector<128xf32> to vector<1x128xf32>
    %c0_74 = arith.constant 0 : index
    %c0_75 = arith.constant 0 : index
    %82 = vector.load %arg6[%c0_74, %c0_75] : memref<128x128xf32, #tpu.memory_space<vmem>>, vector<128x128xf32>
    %cst_76 = arith.constant dense<0.000000e+00> : vector<1x128xf32>
    %83 = tpu.matmul %81, %82, %cst_76 {dimension_numbers = #tpu.dot_dimension_numbers<[1], [0], [0], [1], [0, 0, 1, 1], [], []>} : vector<1x128xf32>, vector<128x128xf32>, vector<1x128xf32> -> vector<1x128xf32>
    %cst_77 = arith.constant 0.001953125 : f32
    %84 = vector.broadcast %cst_77 : f32 to vector<1x128xf32>
    %85 = arith.mulf %83, %84 : vector<1x128xf32>
    %cst_78 = arith.constant 9.99999974E-6 : f32
    %86 = vector.broadcast %cst_78 : f32 to vector<1x128xf32>
    %87 = arith.addf %85, %86 : vector<1x128xf32>
    %88 = math.rsqrt %87 : vector<1x128xf32>
    %89 = vector.broadcast %88 : vector<1x128xf32> to vector<32x128xf32>
    %90 = arith.mulf %78, %89 : vector<32x128xf32>
    %91 = vector.broadcast %69 : vector<1x128xf32> to vector<32x128xf32>
    %92 = arith.mulf %90, %91 : vector<32x128xf32>
    %93 = vector.broadcast %70 : vector<1x128xf32> to vector<32x128xf32>
    %94 = arith.addf %92, %93 : vector<32x128xf32>
    %cst_79 = arith.constant 0.000000e+00 : f32
    %95 = vector.broadcast %cst_79 : f32 to vector<32x128xf32>
    %96 = arith.maximumf %94, %95 : vector<32x128xf32>
    %c0_80 = arith.constant 0 : index
    %c0_81 = arith.constant 0 : index
    %97 = vector.load %arg9[%c0_80, %c0_81] : memref<32x128xf32, #tpu.memory_space<vmem>>, vector<32x128xf32>
    tpu.vector_store %arg9[%c0_80, %c0_81], %96 {strides = array<i32>} : memref<32x128xf32, #tpu.memory_space<vmem>>, vector<32x128xf32>,
    return
  }
}

</mosaic_0001>

<bundles_post_ra>
// kernel: double_conv_forward.1
= control target key start
LH: loop header
LB: loop body
LE: loop exit
PB: predicated region body
PF: predicated region fallthrough
CT: control target
= control target key end

     0   :  { %vm137_vm0 = vcmask 523264   ;;  %vm47_vm1 = vsmask.f32 3328  ;;  %vm48_vm2 = vsmask.f32 7440  ;;  %vm288_vm3 = vcmask 1042432   ;;  %s2534_s1 = inlined_call_operand.vmem [shape: bf16[3,64,128], index: 1, kind: input, shape index: {}]   ;;  %s2535_s0 = inlined_call_operand.vmem [shape: bf16[2,18,64], index: 0, kind: input, shape index: {}]   ;;  %s2536_s2 = inlined_call_operand.vmem [shape: f32[128,128], index: 2, kind: input, shape index: {}, may-alias: {2,6}]   ;;  %s2537_s5 = inlined_call_operand.vmem [shape: bf16[3,128,128], index: 5, kind: input, shape index: {}]   ;;  %s2538_s6 = inlined_call_operand.vmem [shape: f32[128,128], index: 6, kind: input, shape index: {}, may-alias: {2,6}]   ;;  %s2539_s3 = inlined_call_operand.vmem [shape: f32[1,128], index: 3, kind: input, shape index: {}]   ;;  %s2540_s4 = inlined_call_operand.vmem [shape: f32[1,128], index: 4, kind: input, shape index: {}]   ;;  %s2541_s7 = inlined_call_operand.vmem [shape: f32[1,128], index: 7, kind: input, shape index: {}]   ;;  %s2542_s8 = inlined_call_operand.vmem [shape: f32[1,128], index: 8, kind: input, shape index: {}]   ;;  %s2543_s9 = inlined_call_operand.vmem [shape: f32[32,128], index: 9, kind: output, shape index: {}]  }
   0x1   :  { %v1978_v0 = vld [vmem:[%s2534_s1] sm:$0xff]   ;;  %v1979_v1 = vld [vmem:[%s2534_s1 + $0x8] sm:$0xff]   ;;  %v1980_v2 = vld [vmem:[%s2534_s1 + $0x10] sm:$0xff]   ;;  %vm289_vm4 = vcmask 1046532   ;;  %v2022_v59 = vmov 0.0|0.0   ;;  %vm2023_vm7 = vmmov 0  }
   0x2   :  { %1639 = vmatprep.subr.bf16.mxu0 %v1978_v0  ;;  %v1982_v3 = vld [vmem:[%s2534_s1 + $0x20] sm:$0xff]   ;;  %v1985_v9 = vld [vmem:[%s2534_s1 + $0x28] sm:$0xff]   ;;  %v1981_v10 = vld [vmem:[%s2534_s1 + $0x18] sm:$0xff]   ;;  %vm627_vm8 = vcmask 1040384   ;;  %vm628_vm9 = vsmask.f32 256 }
   0x3   :  { %1640 = vmatpush3.bf16.msra.mxu0 %v1978_v0  ;;  %v33_v4 = vld [vmem:[%s2535_s0] sm:$0xf]  ;;  %v2093_v5 = vld [vmem:[%s2535_s0 + $0x4] sm:$0xf]  ;;  %1627 = vmatprep.subr.bf16.mxu1 %v1982_v3  ;;  %v35_v13 = vld [vmem:[%s2535_s0 + $0xc] sm:$0xf] }
   0x4   :  { %1641 = vmatprep.subr.bf16.mxu0 %v1979_v1  ;;  %v51_v6 = vshrl.u32 %v33_v4, 16  ;;  %v54_v7 = vshll.u32 %v33_v4, 16  ;;  %v1409_v8 = vcombine.low %v33_v4, %v2093_v5  ;;  %1628 = vmatpush3.bf16.msra.mxu1 %v1982_v3  ;;  %v64_v14 = vshrl.u32 %v2093_v5, 16  ;;  %v1984_v18 = vld [vmem:[%s2534_s1 + $0x40] sm:$0xff]   ;;  %v2114_v19 = vld [vmem:[%s2535_s0 + $0x10] sm:$0xf]  ;;  %vm2130_vm5 = vmor %vm288_vm3, %vm289_vm4 }
   0x5   :  { %v293_v15 = vrot.slane %v2093_v5, 5  ;;  %1629 = vmatprep.subr.bf16.mxu1 %v1985_v9  ;;  %v75_v16 = vshrl.u32 %v35_v13, 16  ;;  %v78_v17 = vshll.u32 %v35_v13, 16  ;;  %v88_v22 = vshrl.u32 %v2114_v19, 16  ;;  %v1988_v23 = vld [vmem:[%s2534_s1 + $0x30] sm:$0xff]   ;;  %v1990_v27 = vld [vmem:[%s2534_s1 + $0x38] sm:$0xff]   ;;  %vm2142_vm6 = vmor %vm47_vm1, %vm48_vm2 }
   0x6   :  { %v53_v11 = vrot.slane %v51_v6, 4  ;;  %v56_v12 = vrot.slane %v54_v7, 5  ;;  %1647 = vmatprep.mubr.msk.bf16.mxu0 %vm137_vm0, %v1409_v8  ;;  %v1410_v26 = vcombine.low %v35_v13, %v2114_v19  ;;  %v45_v28 = vld [vmem:[%s2535_s0 + $0x8] sm:$0x1]  ;;  %v60_v30 = vshll.u32 %v2093_v5, 16  ;;  %v1989_v53 = vld [vmem:[%s2534_s1 + $0x50] sm:$0xff]   ;;  %vm2279_vm11 = vmand %vm627_vm8, %vm628_vm9 }
   0x7   :  { %1642 = vmatpush3.bf16.msra.mxu0 %v1979_v1  ;;  %v77_v20 = vrot.slane %v75_v16, 4  ;;  %v80_v21 = vrot.slane %v78_v17, 5  ;;  %v295_v25 = vrot.slane %v293_v15, 4  ;;  %v66_v31 = vrot.slane %v64_v14, 4  ;;  %v46_v36 = vld [vmem:[%s2535_s0 + $0x14] sm:$0x1] }
   0x8   :  { %1643 = vmatprep.subr.bf16.mxu0 %v1980_v2  ;;  %1630 = vmatpush3.bf16.msra.mxu1 %v1985_v9  ;;  %v57_v24 = vor.u32 %v56_v12, %v53_v11  ;;  %v70_v32 = vshll.u32 %v45_v28, 16  ;;  %v296_v33 = vrot.slane %v45_v28, 5  ;;  %v1987_v37 = vld [vmem:[%s2534_s1 + $0x48] sm:$0xff]   ;;  %v62_v39 = vrot.slane %v60_v30, 5  ;;  %v282_v42 = vld [vmem:[%s2535_s0] sm:$0xe] }
   0x9   :  { %1631 = vmatprep.subr.bf16.mxu1 %v1988_v23  ;;  %v81_v29 = vor.u32 %v80_v21, %v77_v20  ;;  %v84_v40 = vshll.u32 %v2114_v19, 16  ;;  %v90_v41 = vrot.slane %v88_v22, 4  ;;  %v94_v43 = vshll.u32 %v46_v36, 16  ;;  %v283_v58 = vld [vmem:[%s2535_s0 + $0xc] sm:$0xe]  ;;  %v414_v60 = vld [vmem:[%s2536_s2] sm:$0xff] }
   0xa   :  { %v58_v35 = vrot.slane %v57_v24, 4  ;;  %v1417_v44 = vrot.slane %v282_v42, 9  ;;  %v297_v45 = vsel %vm2130_vm5, %v295_v25, %v296_v33  ;;  %v67_v46 = vor.u32 %v66_v31, %v62_v39  ;;  %v415_v61 = vld [vmem:[%s2536_s2 + $0x8] sm:$0xff]  ;;  %v1991_v5 = vld [vmem:[%s2534_s1 + $0x58] sm:$0xff]   ;;  %v416_v12 = vld [vmem:[%s2536_s2 + $0x10] sm:$0xff] }
   0xb   :  { %1644 = vmatpush3.bf16.msra.mxu0 %v1980_v2  ;;  %v72_v47 = vrot.slane %v70_v32, 5  ;;  %v82_v48 = vrot.slane %v81_v29, 4  ;;  %v86_v49 = vrot.slane %v84_v40, 5  ;;  %v300_v50 = vrot.slane %v2114_v19, 5  ;;  %v417_v13 = vld [vmem:[%s2536_s2 + $0x18] sm:$0xff]  ;;  %v419_v16 = vld [vmem:[%s2536_s2 + $0x28] sm:$0xff] }
   0xc   :  { %1645 = vmatprep.subr.bf16.mxu0 %v1981_v10  ;;  %1632 = vmatpush3.bf16.msra.mxu1 %v1988_v23  ;;  %v63_v51 = vsel %vm2142_vm6, %v58_v35, %v62_v39  ;;  %v294_v52 = vsel %vm2130_vm5, %v1417_v44, %v293_v15  ;;  %v68_v54 = vrot.slane %v67_v46, 4  ;;  %v96_v56 = vrot.slane %v94_v43, 5  ;;  %v418_v15 = vld [vmem:[%s2536_s2 + $0x20] sm:$0xff]  ;;  %v421_v19 = vld [vmem:[%s2536_s2 + $0x38] sm:$0xff]  ;;  %v423_v22 = vld [vmem:[%s2536_s2 + $0x48] sm:$0xff] }
   0xd   :  { %1633 = vmatprep.subr.bf16.mxu1 %v1990_v27  ;;  %v91_v55 = vor.u32 %v90_v41, %v86_v49  ;;  %v1427_v57 = vcombine.low %v294_v52, %v297_v45  ;;  %v87_v63 = vsel %vm2142_vm6, %v82_v48, %v86_v49  ;;  %v303_v2 = vrot.slane %v46_v36, 5  ;;  %v422_v21 = vld [vmem:[%s2536_s2 + $0x40] sm:$0xff]  ;;  %v424_v24 = vld [vmem:[%s2536_s2 + $0x50] sm:$0xff]  ;;  %v425_v25 = vld [vmem:[%s2536_s2 + $0x58] sm:$0xff] }
   0xe   :  { %v73_v62 = vsel %vm2142_vm6, %v68_v54, %v72_v47  ;;  %v1418_v3 = vrot.slane %v283_v58, 9  ;;  %v302_v4 = vrot.slane %v300_v50, 4  ;;  %v2181_v7 = vpack.c.bf16 %v415_v61, %v414_v60  ;;  %v427_v28 = vld [vmem:[%s2536_s2 + $0x68] sm:$0xff]  ;;  %v428_v30 = vld [vmem:[%s2536_s2 + $0x70] sm:$0xff]  ;;  %v429_v31 = vld [vmem:[%s2536_s2 + $0x78] sm:$0xff] }
   0xf   :  { %1646 = vmatpush3.bf16.msra.mxu0 %v1981_v10  ;;  %v92_v0 = vrot.slane %v91_v55, 4  ;;  %v1401_v1 = vcombine.low %v63_v51, %v73_v62  ;;  %v1867_v14 = vpack.c.bf16 %v417_v13, %v416_v12  ;;  %v1870_v17 = vpack.c.bf16 %v419_v16, %v418_v15  ;;  %v2003_v38 = vld [vmem:[%s2537_s5 + $0x10] sm:$0xff]   ;;  %v2013_v34 = vld [vmem:[%s2537_s5 + $0x98] sm:$0xff]  }
  0x10   :  { %1651 = vmatprep.subr.bf16.mxu0 %v1984_v18  ;;  %1634 = vmatpush3.bf16.msra.mxu1 %v1990_v27  ;;  %v301_v9 = vsel %vm2130_vm5, %v1418_v3, %v300_v50  ;;  %v304_v10 = vsel %vm2130_vm5, %v302_v4, %v303_v2  ;;  %v1876_v23 = vpack.c.bf16 %v423_v22, %v422_v21  ;;  %v426_v27 = vld [vmem:[%s2536_s2 + $0x60] sm:$0xff]  ;;  %v2024_v33 = vmov 0.0   ;;  %v633_v21 = vld [vmem:[#allocation2 + $0xc] sm:$0x1] }
  0x11   :  { %1863 = vmatprep.subr.bf16.mxu1 %v2022_v59  ;;  %v97_v6 = vsel %vm2142_vm6, %v92_v0, %v96_v56  ;;  %1635 = vmatprep.mubr.msk.bf16.mxu1 %vm137_vm0, %v1401_v1  ;;  %v1428_v11 = vcombine.low %v301_v9, %v304_v10  ;;  %v1882_v29 = vpack.c.bf16 %v427_v28, %v426_v27  ;;  %vm636_vm10 = vsmask.f32 7938  ;;  %v1993_v28 = vld [vmem:[%s2537_s5 + $0x48] sm:$0xff]  }
  0x12   :  { %1648 = vmatmul.mubr.msk.bf16.vlgmr.msra.gmra.mrb[0].mxu0 %vm137_vm0, %v1410_v26  ;;  %v1402_v8 = vcombine.low %v87_v63, %v97_v6  ;;  %v1879_v26 = vpack.c.bf16 %v425_v25, %v424_v24  ;;  %v1885_v32 = vpack.c.bf16 %v429_v31, %v428_v30  ;;  %vm637_vm12 = vmand %vm627_vm8, %vm636_vm10  ;;  %v638_v24 = vld [vmem:[#allocation2 + $0x8] sm:$0x1]  ;;  %v641_v25 = vld [vmem:[#allocation2 + $0x14] sm:$0x1]  ;;  %vm656_vm13 = vsmask.f32 4368 }
  0x13   :  { %1652 = vmatpush3.bf16.msra.mxu0 %v1984_v18  ;;  %1659 = vmatprep.mubr.msk.bf16.mxu0 %vm137_vm0, %v1427_v57  ;;  %v420_v18 = vld [vmem:[%s2536_s2 + $0x30] sm:$0xff]  ;;  %v501_v57 = vlaneseq  ;;  %v642_v27 = vsel %vm637_vm12, 0, %v641_v25  ;;  %v1995_v30 = vld [vmem:[%s2537_s5 + $0x58] sm:$0xff]   ;;  %v1996_v31 = vld [vmem:[%s2537_s5 + $0x60] sm:$0xff]   ;;  %vm698_vm14 = vcmask 1043456  }
  0x14   :  { %1653 = vmatprep.subr.bf16.mxu0 %v1987_v37  ;;  %1636 = vmatmul.mubr.msk.bf16.vlgmr.msra.gmra.mrb[0].mxu1 %vm137_vm0, %v1402_v8  ;;  %v1873_v20 = vpack.c.bf16 %v421_v19, %v420_v18  ;;  %v1992_v18 = vld [vmem:[%s2537_s5 + $0x40] sm:$0xff]   ;;  %643 = vst [vmem:[#allocation2 + $0x14] sm:$0x1] %v642_v27  ;;  %vm2357_vm15 = vmor %vm628_vm9, %vm656_vm13 }
  0x15   :  { %1865 = vmatpush3.bf16.msra.mxu1 %v2181_v7  ;;  %1695 = vmatprep.mubr.msk.f32.mxu1 %vm2023_vm7, %v2024_v33  ;;  %v502_v58 = vshrl.u32 %v501_v57, 7 }
  0x16   :  { %1866 = vmatprep.subr.bf16.mxu1 %v2022_v59 }
  0x17   :  { %1654 = vmatpush3.bf16.msra.mxu0 %v1987_v37  ;;  %v2254_v60 = vsub.s32 0, %v502_v58 }
  0x18   :  { %1655 = vmatprep.subr.bf16.mxu0 %v1989_v53 }
  0x19   :  { %1868 = vmatpush3.bf16.msra.mxu1 %v1867_v14 }
  0x1a   :  { %1869 = vmatprep.subr.bf16.mxu1 %v2022_v59 }
  0x1b   :  { %1656 = vmatpush3.bf16.msra.mxu0 %v1989_v53 }
  0x1c   :  { %1657 = vmatprep.subr.bf16.mxu0 %v1991_v5 }
  0x1d   :  { %1871 = vmatpush3.bf16.msra.mxu1 %v1870_v17 }
  0x1e   :  { %1872 = vmatprep.subr.bf16.mxu1 %v2022_v59 }
  0x1f   :  { %1658 = vmatpush3.bf16.msra.mxu0 %v1991_v5 }
  0x20   :  { %1733 = vmatprep.subr.bf16.mxu0 %v1992_v18 }
  0x21   :  { %1874 = vmatpush3.bf16.msra.mxu1 %v1873_v20 }
  0x22   :  { %1660 = vmatmul.mubr.msk.bf16.vlgmr.msra.gmra.mrb[0].mxu0 %vm137_vm0, %v1428_v11  ;;  %1875 = vmatprep.subr.bf16.mxu1 %v2022_v59  ;;  %vm2362_vm0 = vmand %vm698_vm14, %vm636_vm10 }
  0x23   :  { %1734 = vmatpush3.bf16.msra.mxu0 %v1992_v18 }
  0x24   :  { %1735 = vmatprep.subr.bf16.mxu0 %v1993_v28 }
  0x25   :  { %1877 = vmatpush3.bf16.msra.mxu1 %v1876_v23 }
  0x26   :  { %1878 = vmatprep.subr.bf16.mxu1 %v2022_v59 }
  0x27   :  { %1736 = vmatpush3.bf16.msra.mxu0 %v1993_v28 }
  0x29   :  { %1880 = vmatpush3.bf16.msra.mxu1 %v1879_v26 }
  0x2a   :  { %1881 = vmatprep.subr.bf16.mxu1 %v2022_v59 }
  0x2d   :  { %1883 = vmatpush3.bf16.msra.mxu1 %v1882_v29 }
  0x2e   :  { %1884 = vmatprep.subr.bf16.mxu1 %v2022_v59 }
  0x31   :  { %1886 = vmatpush3.bf16.msra.mxu1 %v1885_v32 }
  0x32   :  { %1887 = vmatprep.subr.bf16.mxu1 %v2022_v59 }
  0xe7   :  { %v1637_v35 = vpop.f32.mrb[0].mxu1 }
  0xe8   :  { %v178_v36 = vpop.f32.mrb[1].mxu1 }
  0xe9   :  { %v1638_v37 = vpop.f32.mrb[2].mxu1 }
  0xea   :  { %v181_v39 = vpop.f32.mrb[3].mxu1 }
  0xf5   :  { %v1661_v40 = vpop.f32.mrb[0].mxu0 }
  0xf6   :  { %v1959_v41 = vadd.f32 %v1661_v40, %v1637_v35  ;;  %v384_v42 = vpop.f32.mrb[1].mxu0  ;;  %v1998_v35 = vld [vmem:[%s2537_s5 + $0x70] sm:$0xff]   ;;  %v1173_v40 = vld [vmem:[%s2538_s6 + $0x8] sm:$0xff] }
  0xf7   :  { %v1960_v43 = vadd.f32 %v384_v42, %v178_v36  ;;  %v1662_v44 = vpop.f32.mrb[2].mxu0  ;;  %v1999_v36 = vld [vmem:[%s2537_s5 + $0x78] sm:$0xff]  }
  0xf8   :  { %v1961_v45 = vadd.f32 %v1662_v44, %v1638_v37  ;;  %v387_v46 = vpop.f32.mrb[3].mxu0  ;;  %v2312_v37 = vld [vmem:[%s2537_s5] sm:$0xff]  }
  0xf9   :  { %v1962_v47 = vadd.f32 %v387_v46, %v181_v39  ;;  %v1172_v39 = vld [vmem:[%s2538_s6] sm:$0xff]  ;;  %v1177_v46 = vld [vmem:[%s2538_s6 + $0x28] sm:$0xff] }
  0xfa   :  { %v2324_v42 = vpack.c.bf16 %v1173_v40, %v1172_v39  ;;  %v711_v40 = vld [vmem:[#allocation2 + $0x14] sm:$0x1] }
  0xfb   :  { %v405_v48 = vadd.f32 %v1962_v47, %v1960_v43 }
  0xfd   :  { %v406_v49 = vadd.f32 %v1959_v41, %v405_v48 }
  0xff   :  { %v407_v50 = vadd.f32 %v1961_v45, %v406_v49 }
 0x101   :  { %v408_v51 = vrot.slane %v407_v50, 4 }
 0x103   :  { %v409_v52 = vadd.f32 %v408_v51, %v407_v50 }
 0x105   :  { %v410_v53 = vrot.slane %v409_v52, 2 }
 0x107   :  { %v411_v54 = vadd.f32 %v410_v53, %v409_v52 }
 0x109   :  { %v412_v55 = vrot.slane %v411_v54, 1 }
 0x10b   :  { %v413_v56 = vadd.f32 %v412_v55, %v411_v54  ;;  %v1435_v54 = vld [vmem:[%s2539_s3] ss:$0 sm:$0xff] }
 0x10d   :  { %1696 = vmatmul.mubr.f32.vlgmr.msra.gmra.mrb[4].mxu1 %v413_v56 }
 0x10e   :  { %1889 = vmatpush3.bf16.msra.mxu1 %v2181_v7  ;;  %1730 = vmatprep.mubr.msk.f32.mxu1 %vm2023_vm7, %v2024_v33 }
 0x10f   :  { %1890 = vmatprep.subr.bf16.mxu1 %v2022_v59 }
 0x112   :  { %1892 = vmatpush3.bf16.msra.mxu1 %v1867_v14 }
 0x113   :  { %1893 = vmatprep.subr.bf16.mxu1 %v2022_v59 }
 0x116   :  { %1895 = vmatpush3.bf16.msra.mxu1 %v1870_v17 }
 0x117   :  { %1896 = vmatprep.subr.bf16.mxu1 %v2022_v59 }
 0x11a   :  { %1898 = vmatpush3.bf16.msra.mxu1 %v1873_v20  ;;  %v630_v20 = vld [vmem:[#allocation2] sm:$0x1] }
 0x11b   :  { %1899 = vmatprep.subr.bf16.mxu1 %v2022_v59  ;;  %v631_v22 = vsel %vm2279_vm11, 0, %v630_v20 }
 0x11c   :  { %632 = vst [vmem:[#allocation2] sm:$0x1] %v631_v22 }
 0x11e   :  { %1901 = vmatpush3.bf16.msra.mxu1 %v1876_v23  ;;  %v634_v23 = vsel %vm2279_vm11, 0, %v633_v21 }
 0x11f   :  { %1902 = vmatprep.subr.bf16.mxu1 %v2022_v59  ;;  %635 = vst [vmem:[#allocation2 + $0xc] sm:$0x1] %v634_v23 }
 0x122   :  { %1904 = vmatpush3.bf16.msra.mxu1 %v1879_v26  ;;  %v639_v26 = vsel %vm637_vm12, 0, %v638_v24 }
 0x123   :  { %1905 = vmatprep.subr.bf16.mxu1 %v2022_v59  ;;  %640 = vst [vmem:[#allocation2 + $0x8] sm:$0x1] %v639_v26  ;;  %v700_v24 = vld [vmem:[#allocation2] sm:$0xf] }
 0x126   :  { %1907 = vmatpush3.bf16.msra.mxu1 %v1882_v29  ;;  %v1994_v29 = vld [vmem:[%s2537_s5 + $0x50] sm:$0xff]   ;;  %v707_v39 = vld [vmem:[#allocation2 + $0xc] sm:$0xf] }
 0x127   :  { %1908 = vmatprep.subr.bf16.mxu1 %v2022_v59  ;;  %1737 = vmatprep.subr.bf16.mxu0 %v1994_v29 }
 0x128   :  { %1738 = vmatpush3.bf16.msra.mxu0 %v1994_v29 }
 0x129   :  { %1739 = vmatprep.subr.bf16.mxu0 %v1995_v30 }
 0x12a   :  { %1910 = vmatpush3.bf16.msra.mxu1 %v1885_v32  ;;  %v1997_v32 = vld [vmem:[%s2537_s5 + $0x68] sm:$0xff]  }
 0x12b   :  { %1911 = vmatprep.subr.bf16.mxu1 %v2022_v59 }
 0x12c   :  { %1740 = vmatpush3.bf16.msra.mxu0 %v1995_v30  ;;  %v704_v30 = vld [vmem:[#allocation2 + $0x8] sm:$0x1] }
 0x12d   :  { %1741 = vmatprep.subr.bf16.mxu0 %v1996_v31 }
 0x130   :  { %1742 = vmatpush3.bf16.msra.mxu0 %v1996_v31 }
 0x131   :  { %1743 = vmatprep.subr.bf16.mxu0 %v1997_v32 }
 0x134   :  { %1744 = vmatpush3.bf16.msra.mxu0 %v1997_v32 }
 0x135   :  { %1745 = vmatprep.subr.bf16.mxu0 %v1998_v35 }
 0x138   :  { %1746 = vmatpush3.bf16.msra.mxu0 %v1998_v35 }
 0x139   :  { %1747 = vmatprep.subr.bf16.mxu0 %v1999_v36 }
 0x13c   :  { %1748 = vmatpush3.bf16.msra.mxu0 %v1999_v36 }
 0x13d   :  { %1753 = vmatprep.subr.bf16.mxu0 %v2312_v37 }
 0x1e0   :  { %v496_v61 = vpop.f32.mrb[4].mxu1 }
 0x1e1   :  { %v500_v62 = vmul.f32 0.001953125, %v496_v61  ;;  %v1697_v63 = vpop.f32.mrb[5].mxu1  ;;  %v1436_v61 = vld [vmem:[%s2540_s4] ss:$0 sm:$0xff] }
 0x1e3   :  { %v504_v0 = vrot.slane %v500_v62, %v2254_v60 }
 0x1e5   :  { %v2257_v1 = vsub.f32 %v1960_v43, %v504_v0  ;;  %v2259_v2 = vsub.f32 %v1962_v47, %v504_v0  ;;  %v2261_v3 = vsub.f32 %v1959_v41, %v504_v0  ;;  %v2263_v4 = vsub.f32 %v1961_v45, %v504_v0  ;;  %v1174_v41 = vld [vmem:[%s2538_s6 + $0x10] sm:$0xff]  ;;  %v1175_v43 = vld [vmem:[%s2538_s6 + $0x18] sm:$0xff]  ;;  %v1176_v45 = vld [vmem:[%s2538_s6 + $0x20] sm:$0xff] }
 0x1e6   :  { %v2330_v44 = vpack.c.bf16 %v1175_v43, %v1174_v41  ;;  %v2340_v50 = vpack.c.bf16 %v1177_v46, %v1176_v45 }
 0x1e7   :  { %v509_v5 = vmul.f32 %v2257_v1, %v2257_v1  ;;  %v510_v6 = vmul.f32 %v2259_v2, %v2259_v2  ;;  %v511_v7 = vmul.f32 %v2261_v3, %v2261_v3  ;;  %v512_v9 = vmul.f32 %v2263_v4, %v2263_v4 }
 0x1e9   :  { %v513_v8 = vadd.f32 %v510_v6, %v509_v5 }
 0x1eb   :  { %v514_v10 = vadd.f32 %v513_v8, %v511_v7 }
 0x1ed   :  { %v515_v11 = vadd.f32 %v514_v10, %v512_v9 }
 0x1ef   :  { %v516_v12 = vrot.slane %v515_v11, 4 }
 0x1f1   :  { %v517_v13 = vadd.f32 %v516_v12, %v515_v11 }
 0x1f3   :  { %v518_v14 = vrot.slane %v517_v13, 2 }
 0x1f5   :  { %v519_v15 = vadd.f32 %v518_v14, %v517_v13 }
 0x1f7   :  { %v520_v16 = vrot.slane %v519_v15, 1 }
 0x1f9   :  { %v521_v17 = vadd.f32 %v520_v16, %v519_v15 }
 0x1fb   :  { %1731 = vmatmul.mubr.f32.vlgmr.msra.gmra.mrb[6].mxu1 %v521_v17 }
 0x1fc   :  { %1825 = vmatprep.mubr.msk.f32.mxu1 %vm2023_vm7, %v2024_v33  ;;  %1913 = vmatpush3.bf16.msra.mxu1 %v2324_v42 }
 0x1fd   :  { %1914 = vmatprep.subr.bf16.mxu1 %v2022_v59 }
 0x200   :  { %1916 = vmatpush3.bf16.msra.mxu1 %v2330_v44 }
 0x201   :  { %1917 = vmatprep.subr.bf16.mxu1 %v2022_v59 }
 0x204   :  { %1919 = vmatpush3.bf16.msra.mxu1 %v2340_v50 }
 0x205   :  { %1920 = vmatprep.subr.bf16.mxu1 %v2022_v59 }
 0x2ce   :  { %v588_v47 = vpop.f32.mrb[6].mxu1 }
 0x2cf   :  { %v592_v48 = vmul.f32 0.001953125, %v588_v47  ;;  %v1732_v49 = vpop.f32.mrb[7].mxu1 }
 0x2d1   :  { %v593_v51 = vadd.f32 1e-05, %v592_v48 }
 0x2d3   :  { %2018 = vrsqrt.f32 %v593_v51 }
 0x2dd   :  { %v2019_v52 = vpop.eup %2018 }
 0x2de   :  { %v598_v53 = vrot.slane %v2019_v52, %v2254_v60 }
 0x2e0   :  { %v599_v55 = vmul.f32 %v598_v53, %v2257_v1  ;;  %v600_v56 = vmul.f32 %v598_v53, %v2259_v2  ;;  %v601_v57 = vmul.f32 %v598_v53, %v2261_v3  ;;  %v602_v58 = vmul.f32 %v598_v53, %v2263_v4 }
 0x2e2   :  { %v609_v62 = vmul.f32 %v1435_v54, %v599_v55  ;;  %v610_v63 = vmul.f32 %v1435_v54, %v600_v56  ;;  %v611_v0 = vmul.f32 %v1435_v54, %v601_v57  ;;  %v612_v5 = vmul.f32 %v1435_v54, %v602_v58 }
 0x2e4   :  { %v619_v6 = vadd.f32 %v1436_v61, %v609_v62  ;;  %v620_v7 = vadd.f32 %v1436_v61, %v610_v63  ;;  %v621_v8 = vadd.f32 %v1436_v61, %v611_v0  ;;  %v622_v9 = vadd.f32 %v1436_v61, %v612_v5 }
 0x2e6   :  { %v623_v10 = vmax.f32 %v619_v6, 0.0  ;;  %v624_v1 = vmax.f32 %v620_v7, 0.0  ;;  %v625_v11 = vmax.f32 %v621_v8, 0.0  ;;  %v626_v2 = vmax.f32 %v622_v9, 0.0 }
 0x2e8   :  { %v1507_v12 = vpack.c.bf16 %v623_v10, %v623_v10  ;;  %v1508_v3 = vpack.c.bf16 %v624_v1, %v624_v1  ;;  %v1509_v13 = vpack.c.bf16 %v625_v11, %v625_v11  ;;  %v1510_v4 = vpack.c.bf16 %v626_v2, %v626_v2 }
 0x2ea   :  { %v659_v14 = vshrl.u32 %v1507_v12, 16  ;;  %v667_v15 = vshrl.u32 %v1508_v3, 16  ;;  %v676_v16 = vshrl.u32 %v1509_v13, 16  ;;  %v684_v17 = vshrl.u32 %v1510_v4, 16 }
 0x2eb   :  { %v662_v21 = vshll.u32 %v1507_v12, 16  ;;  %v670_v23 = vshll.u32 %v1508_v3, 16  ;;  %v679_v26 = vshll.u32 %v1509_v13, 16  ;;  %v687_v28 = vshll.u32 %v1510_v4, 16 }
 0x2ec   :  { %v661_v20 = vrot.slane %v659_v14, 7  ;;  %v669_v22 = vrot.slane %v667_v15, 7  ;;  %v678_v25 = vrot.slane %v676_v16, 7  ;;  %v686_v27 = vrot.slane %v684_v17, 7 }
 0x2ee   :  { %v664_v31 = vor.u32 %v662_v21, %v661_v20  ;;  %v665_v32 = vrot.slane %v661_v20, 4  ;;  %v672_v35 = vor.u32 %v670_v23, %v669_v22  ;;  %v674_v36 = vrot.slane %v669_v22, 4 }
 0x2ef   :  { %v681_v41 = vor.u32 %v679_v26, %v678_v25  ;;  %v682_v43 = vrot.slane %v678_v25, 4  ;;  %v689_v45 = vor.u32 %v687_v28, %v686_v27  ;;  %v691_v46 = vrot.slane %v686_v27, 4 }
 0x2f0   :  { %v673_v47 = vsel %vm2357_vm15, %v665_v32, %v672_v35  ;;  %v701_v48 = vsel %vm2362_vm0, %v664_v31, %v700_v24  ;;  %v705_v49 = vsel %vm2279_vm11, %v674_v36, %v704_v30 }
 0x2f1   :  { %v690_v51 = vsel %vm2357_vm15, %v682_v43, %v689_v45  ;;  %702 = vst [vmem:[#allocation2] sm:$0xf] %v701_v48  ;;  %703 = vst [vmem:[#allocation2 + $0x4] sm:$0xf] %v673_v47  ;;  %v708_v52 = vsel %vm2362_vm0, %v681_v41, %v707_v39  ;;  %v712_v53 = vsel %vm2279_vm11, %v691_v46, %v711_v40  ;;  %v2002_v45 = vld [vmem:[%s2537_s5 + $0x8] sm:$0xff]   ;;  %v2004_v48 = vld [vmem:[%s2537_s5 + $0x18] sm:$0xff]  }
 0x2f2   :  { %706 = vst [vmem:[#allocation2 + $0x8] sm:$0x1] %v705_v49  ;;  %709 = vst [vmem:[#allocation2 + $0xc] sm:$0xf] %v708_v52  ;;  %v2005_v49 = vld [vmem:[%s2537_s5 + $0x20] sm:$0xff]  }
 0x2f3   :  { %710 = vst [vmem:[#allocation2 + $0x10] sm:$0xf] %v690_v51  ;;  %713 = vst [vmem:[#allocation2 + $0x14] sm:$0x1] %v712_v53  ;;  %v2007_v51 = vld [vmem:[%s2537_s5 + $0x30] sm:$0xff]   ;;  %v2008_v53 = vld [vmem:[%s2537_s5 + $0x38] sm:$0xff]  }
 0x2f8   :  { %v714_v54 = vld [vmem:[#allocation2] sm:$0xf]  ;;  %v2378_v55 = vld [vmem:[#allocation2 + $0x4] sm:$0xf] }
 0x2f9   :  { %v2380_v56 = vld [vmem:[#allocation2 + $0x8] sm:$0x1]  ;;  %v737_v57 = vshrl.u32 %v714_v54, 16  ;;  %v740_v58 = vshll.u32 %v714_v54, 16  ;;  %v746_v61 = vshll.u32 %v2378_v55, 16  ;;  %v750_v62 = vshrl.u32 %v2378_v55, 16 }
 0x2fa   :  { %v2384_v63 = vld [vmem:[#allocation2 + $0xc] sm:$0xf]  ;;  %v756_v0 = vshll.u32 %v2380_v56, 16  ;;  %v2387_v19 = vld [vmem:[#allocation2 + $0x10] sm:$0xf]  ;;  %v1467_v47 = vcombine.low %v714_v54, %v2378_v55  ;;  %v1023_v52 = vrot.slane %v2378_v55, 5 }
 0x2fb   :  { %v761_v5 = vshrl.u32 %v2384_v63, 16  ;;  %v739_v6 = vrot.slane %v737_v57, 4  ;;  %v742_v7 = vrot.slane %v740_v58, 5  ;;  %v748_v8 = vrot.slane %v746_v61, 5  ;;  %v735_v10 = vld [vmem:[#allocation2 + $0x14] sm:$0x1] }
 0x2fc   :  { %v752_v9 = vrot.slane %v750_v62, 4  ;;  %v764_v11 = vshll.u32 %v2384_v63, 16  ;;  %v770_v2 = vshll.u32 %v2387_v19, 16  ;;  %v774_v13 = vshrl.u32 %v2387_v19, 16  ;;  %v1016_v4 = vld [vmem:[#allocation2 + $0xc] sm:$0xe] }
 0x2fd   :  { %v763_v1 = vrot.slane %v761_v5, 4  ;;  %v743_v12 = vor.u32 %v742_v7, %v739_v6  ;;  %v758_v14 = vrot.slane %v756_v0, 5  ;;  %v780_v21 = vshll.u32 %v735_v10, 16  ;;  %v1015_v54 = vld [vmem:[#allocation2] sm:$0xe]  ;;  %v2011_v6 = vld [vmem:[%s2537_s5 + $0x88] sm:$0xff]  }
 0x2fe   :  { %v753_v3 = vor.u32 %v752_v9, %v748_v8  ;;  %v766_v15 = vrot.slane %v764_v11, 5  ;;  %v772_v16 = vrot.slane %v770_v2, 5  ;;  %v776_v20 = vrot.slane %v774_v13, 4  ;;  %v2010_v58 = vld [vmem:[%s2537_s5 + $0x80] sm:$0xff]   ;;  %v2017_v9 = vld [vmem:[%s2537_s5 + $0xb8] sm:$0xff]   ;;  %v1182_v13 = vld [vmem:[%s2538_s6 + $0x50] sm:$0xff] }
 0x2ff   :  { %v744_v17 = vrot.slane %v743_v12, 4  ;;  %v1478_v23 = vrot.slane %v1016_v4, 9  ;;  %v1030_v27 = vrot.slane %v2387_v19, 5  ;;  %v782_v31 = vrot.slane %v780_v21, 5  ;;  %v1180_v2 = vld [vmem:[%s2538_s6 + $0x40] sm:$0xff]  ;;  %v1181_v12 = vld [vmem:[%s2538_s6 + $0x48] sm:$0xff] }
 0x300   :  { %v754_v18 = vrot.slane %v753_v3, 4  ;;  %v767_v22 = vor.u32 %v766_v15, %v763_v1  ;;  %v777_v26 = vor.u32 %v776_v20, %v772_v16  ;;  %v1033_v35 = vrot.slane %v735_v10, 5  ;;  %v1178_v10 = vld [vmem:[%s2538_s6 + $0x30] sm:$0xff]  ;;  %v1179_v1 = vld [vmem:[%s2538_s6 + $0x38] sm:$0xff]  ;;  %v1184_v15 = vld [vmem:[%s2538_s6 + $0x60] sm:$0xff] }
 0x301   :  { %v749_v24 = vsel %vm2142_vm6, %v744_v17, %v748_v8  ;;  %v1032_v32 = vrot.slane %v1030_v27, 4  ;;  %v2404_v40 = vsel %vm2130_vm5, %v1478_v23, %v1030_v27  ;;  %v1025_v57 = vrot.slane %v1023_v52, 4  ;;  %v2016_v8 = vld [vmem:[%s2537_s5 + $0xb0] sm:$0xff]   ;;  %v1183_v4 = vld [vmem:[%s2538_s6 + $0x58] sm:$0xff] }
 0x302   :  { %v759_v25 = vsel %vm2142_vm6, %v754_v18, %v758_v14  ;;  %v768_v29 = vrot.slane %v767_v22, 4  ;;  %v778_v30 = vrot.slane %v777_v26, 4  ;;  %v1477_v61 = vrot.slane %v1015_v54, 9  ;;  %v1186_v18 = vld [vmem:[%s2538_s6 + $0x70] sm:$0xff]  ;;  %v1187_v20 = vld [vmem:[%s2538_s6 + $0x78] sm:$0xff] }
 0x303   :  { %v1457_v28 = vcombine.low %v749_v24, %v759_v25  ;;  %v2408_v41 = vsel %vm2130_vm5, %v1032_v32, %v1033_v35  ;;  %v1026_v62 = vrot.slane %v2380_v56, 5  ;;  %v1468_v0 = vcombine.low %v2384_v63, %v2387_v19  ;;  %v2012_v56 = vld [vmem:[%s2537_s5 + $0x90] sm:$0xff]   ;;  %v2014_v63 = vld [vmem:[%s2537_s5 + $0xa0] sm:$0xff]   ;;  %v2015_v19 = vld [vmem:[%s2537_s5 + $0xa8] sm:$0xff]  }
 0x304   :  { %v773_v36 = vsel %vm2142_vm6, %v768_v29, %v772_v16  ;;  %v783_v39 = vsel %vm2142_vm6, %v778_v30, %v782_v31  ;;  %v1496_v46 = vcombine.low %v2404_v40, %v2408_v41  ;;  %v1024_v5 = vsel %vm2130_vm5, %v1477_v61, %v1023_v52  ;;  %v1185_v16 = vld [vmem:[%s2538_s6 + $0x68] sm:$0xff] }
 0x305   :  { %1749 = vmatprep.mubr.bf16.mxu0 %v1457_v28  ;;  %v1458_v43 = vcombine.low %v773_v36, %v783_v39  ;;  %v1027_v55 = vsel %vm2130_vm5, %v1025_v57, %v1026_v62  ;;  %v1921_v11 = vpack.c.bf16 %v1179_v1, %v1178_v10  ;;  %v1924_v3 = vpack.c.bf16 %v1181_v12, %v1180_v2 }
 0x306   :  { %v1495_v7 = vcombine.low %v1024_v5, %v1027_v55  ;;  %v1927_v14 = vpack.c.bf16 %v1183_v4, %v1182_v13  ;;  %v1930_v17 = vpack.c.bf16 %v1185_v16, %v1184_v15  ;;  %v1933_v21 = vpack.c.bf16 %v1187_v20, %v1186_v18 }
 0x307   :  { %1750 = vmatmul.mubr.bf16.vlgmr.msra.gmra.mrb[4].mxu0 %v1458_v43  ;;  %1922 = vmatpush3.bf16.msra.mxu1 %v1921_v11 }
 0x308   :  { %1754 = vmatpush3.bf16.msra.mxu0 %v2312_v37  ;;  %1769 = vmatprep.mubr.bf16.mxu0 %v1467_v47  ;;  %v2006_v37 = vld [vmem:[%s2537_s5 + $0x28] sm:$0xff]  }
 0x309   :  { %1755 = vmatprep.subr.bf16.mxu0 %v2002_v45  ;;  %1923 = vmatprep.subr.bf16.mxu1 %v2022_v59 }
 0x30b   :  { %1925 = vmatpush3.bf16.msra.mxu1 %v1924_v3 }
 0x30c   :  { %1756 = vmatpush3.bf16.msra.mxu0 %v2002_v45  ;;  %1926 = vmatprep.subr.bf16.mxu1 %v2022_v59 }
 0x30d   :  { %1757 = vmatprep.subr.bf16.mxu0 %v2003_v38 }
 0x30f   :  { %1928 = vmatpush3.bf16.msra.mxu1 %v1927_v14 }
 0x310   :  { %1758 = vmatpush3.bf16.msra.mxu0 %v2003_v38  ;;  %1929 = vmatprep.subr.bf16.mxu1 %v2022_v59 }
 0x311   :  { %1759 = vmatprep.subr.bf16.mxu0 %v2004_v48 }
 0x313   :  { %1931 = vmatpush3.bf16.msra.mxu1 %v1930_v17 }
 0x314   :  { %1760 = vmatpush3.bf16.msra.mxu0 %v2004_v48  ;;  %1932 = vmatprep.subr.bf16.mxu1 %v2022_v59 }
 0x315   :  { %1761 = vmatprep.subr.bf16.mxu0 %v2005_v49 }
 0x317   :  { %1934 = vmatpush3.bf16.msra.mxu1 %v1933_v21 }
 0x318   :  { %1762 = vmatpush3.bf16.msra.mxu0 %v2005_v49  ;;  %1935 = vmatprep.subr.bf16.mxu1 %v2022_v59 }
 0x319   :  { %1763 = vmatprep.subr.bf16.mxu0 %v2006_v37 }
 0x31c   :  { %1764 = vmatpush3.bf16.msra.mxu0 %v2006_v37 }
 0x31d   :  { %1765 = vmatprep.subr.bf16.mxu0 %v2007_v51 }
 0x320   :  { %1766 = vmatpush3.bf16.msra.mxu0 %v2007_v51 }
 0x321   :  { %1767 = vmatprep.subr.bf16.mxu0 %v2008_v53 }
 0x324   :  { %1768 = vmatpush3.bf16.msra.mxu0 %v2008_v53 }
 0x325   :  { %1773 = vmatprep.subr.bf16.mxu0 %v2010_v58 }
 0x327   :  { %1770 = vmatmul.mubr.bf16.vlgmr.msra.gmra.mrb[4].mxu0 %v1468_v0 }
 0x328   :  { %1774 = vmatpush3.bf16.msra.mxu0 %v2010_v58  ;;  %1789 = vmatprep.mubr.bf16.mxu0 %v1495_v7 }
 0x329   :  { %1775 = vmatprep.subr.bf16.mxu0 %v2011_v6 }
 0x32c   :  { %1776 = vmatpush3.bf16.msra.mxu0 %v2011_v6  ;;  %v1505_v6 = vld [vmem:[%s2541_s7] ss:$0 sm:$0xff] }
 0x32d   :  { %1777 = vmatprep.subr.bf16.mxu0 %v2012_v56 }
 0x330   :  { %1778 = vmatpush3.bf16.msra.mxu0 %v2012_v56 }
 0x331   :  { %1779 = vmatprep.subr.bf16.mxu0 %v2013_v34 }
 0x334   :  { %1780 = vmatpush3.bf16.msra.mxu0 %v2013_v34 }
 0x335   :  { %1781 = vmatprep.subr.bf16.mxu0 %v2014_v63 }
 0x338   :  { %1782 = vmatpush3.bf16.msra.mxu0 %v2014_v63 }
 0x339   :  { %1783 = vmatprep.subr.bf16.mxu0 %v2015_v19 }
 0x33c   :  { %1784 = vmatpush3.bf16.msra.mxu0 %v2015_v19  ;;  %v1506_v19 = vld [vmem:[%s2542_s8] ss:$0 sm:$0xff] }
 0x33d   :  { %1785 = vmatprep.subr.bf16.mxu0 %v2016_v8 }
 0x340   :  { %1786 = vmatpush3.bf16.msra.mxu0 %v2016_v8 }
 0x341   :  { %1787 = vmatprep.subr.bf16.mxu0 %v2017_v9 }
 0x344   :  { %1788 = vmatpush3.bf16.msra.mxu0 %v2017_v9 }
 0x347   :  { %1790 = vmatmul.mubr.bf16.vlgmr.msra.gmra.mrb[4].mxu0 %v1496_v46 }
 0x41a   :  { %v1791_v22 = vpop.f32.mrb[4].mxu0 }
 0x41b   :  { %v1142_v23 = vpop.f32.mrb[5].mxu0 }
 0x41c   :  { %v1792_v24 = vpop.f32.mrb[6].mxu0 }
 0x41d   :  { %v1145_v25 = vpop.f32.mrb[7].mxu0 }
 0x41e   :  { %v1163_v26 = vadd.f32 %v1145_v25, %v1142_v23 }
 0x420   :  { %v1164_v27 = vadd.f32 %v1791_v22, %v1163_v26 }
 0x422   :  { %v1165_v28 = vadd.f32 %v1792_v24, %v1164_v27 }
 0x424   :  { %v1166_v29 = vrot.slane %v1165_v28, 4 }
 0x426   :  { %v1167_v30 = vadd.f32 %v1166_v29, %v1165_v28 }
 0x428   :  { %v1168_v31 = vrot.slane %v1167_v30, 2 }
 0x42a   :  { %v1169_v32 = vadd.f32 %v1168_v31, %v1167_v30 }
 0x42c   :  { %v1170_v35 = vrot.slane %v1169_v32, 1 }
 0x42e   :  { %v1171_v36 = vadd.f32 %v1170_v35, %v1169_v32 }
 0x430   :  { %1826 = vmatmul.mubr.f32.vlgmr.msra.gmra.mrb[8].mxu1 %v1171_v36 }
 0x431   :  { %1937 = vmatpush3.bf16.msra.mxu1 %v2324_v42  ;;  %1860 = vmatprep.mubr.msk.f32.mxu1 %vm2023_vm7, %v2024_v33 }
 0x432   :  { %1938 = vmatprep.subr.bf16.mxu1 %v2022_v59 }
 0x435   :  { %1940 = vmatpush3.bf16.msra.mxu1 %v2330_v44 }
 0x436   :  { %1941 = vmatprep.subr.bf16.mxu1 %v2022_v59 }
 0x439   :  { %1943 = vmatpush3.bf16.msra.mxu1 %v2340_v50 }
 0x43a   :  { %1944 = vmatprep.subr.bf16.mxu1 %v2022_v59 }
 0x43d   :  { %1946 = vmatpush3.bf16.msra.mxu1 %v1921_v11 }
 0x43e   :  { %1947 = vmatprep.subr.bf16.mxu1 %v2022_v59 }
 0x441   :  { %1949 = vmatpush3.bf16.msra.mxu1 %v1924_v3 }
 0x442   :  { %1950 = vmatprep.subr.bf16.mxu1 %v2022_v59 }
 0x445   :  { %1952 = vmatpush3.bf16.msra.mxu1 %v1927_v14 }
 0x446   :  { %1953 = vmatprep.subr.bf16.mxu1 %v2022_v59 }
 0x449   :  { %1955 = vmatpush3.bf16.msra.mxu1 %v1930_v17 }
 0x44a   :  { %1956 = vmatprep.subr.bf16.mxu1 %v2022_v59 }
 0x44d   :  { %1958 = vmatpush3.bf16.msra.mxu1 %v1933_v21 }
 0x503   :  { %v1254_v33 = vpop.f32.mrb[8].mxu1 }
 0x504   :  { %v1258_v42 = vmul.f32 0.001953125, %v1254_v33  ;;  %v1827_v44 = vpop.f32.mrb[9].mxu1 }
 0x506   :  { %v1262_v50 = vrot.slane %v1258_v42, %v2254_v60 }
 0x508   :  { %v1263_v39 = vsub.f32 %v1142_v23, %v1262_v50  ;;  %v1264_v40 = vsub.f32 %v1145_v25, %v1262_v50  ;;  %v1265_v41 = vsub.f32 %v1791_v22, %v1262_v50  ;;  %v1266_v43 = vsub.f32 %v1792_v24, %v1262_v50 }
 0x50a   :  { %v1267_v45 = vmul.f32 %v1263_v39, %v1263_v39  ;;  %v1268_v46 = vmul.f32 %v1264_v40, %v1264_v40  ;;  %v1269_v47 = vmul.f32 %v1265_v41, %v1265_v41  ;;  %v1270_v48 = vmul.f32 %v1266_v43, %v1266_v43 }
 0x50c   :  { %v1271_v38 = vadd.f32 %v1268_v46, %v1267_v45 }
 0x50e   :  { %v1272_v49 = vadd.f32 %v1271_v38, %v1269_v47 }
 0x510   :  { %v1273_v37 = vadd.f32 %v1272_v49, %v1270_v48 }
 0x512   :  { %v1274_v51 = vrot.slane %v1273_v37, 4 }
 0x514   :  { %v1275_v52 = vadd.f32 %v1274_v51, %v1273_v37 }
 0x516   :  { %v1276_v59 = vrot.slane %v1275_v52, 2 }
 0x518   :  { %v1277_v53 = vadd.f32 %v1276_v59, %v1275_v52 }
 0x51a   :  { %v1278_v54 = vrot.slane %v1277_v53, 1 }
 0x51c   :  { %v1279_v57 = vadd.f32 %v1278_v54, %v1277_v53 }
 0x51e   :  { %1861 = vmatmul.mubr.f32.vlgmr.msra.gmra.mrb[10].mxu1 %v1279_v57 }
 0x5f1   :  { %v1346_v58 = vpop.f32.mrb[10].mxu1 }
 0x5f2   :  { %v1350_v61 = vmul.f32 0.001953125, %v1346_v58  ;;  %v1862_v62 = vpop.f32.mrb[11].mxu1 }
 0x5f4   :  { %v1351_v55 = vadd.f32 1e-05, %v1350_v61 }
 0x5f6   :  { %2020 = vrsqrt.f32 %v1351_v55 }
 0x600   :  { %v2021_v0 = vpop.eup %2020 }
 0x601   :  { %v1356_v5 = vrot.slane %v2021_v0, %v2254_v60 }
 0x603   :  { %v1357_v7 = vmul.f32 %v1356_v5, %v1263_v39  ;;  %v1358_v56 = vmul.f32 %v1356_v5, %v1264_v40  ;;  %v1359_v34 = vmul.f32 %v1356_v5, %v1265_v41  ;;  %v1360_v63 = vmul.f32 %v1356_v5, %v1266_v43 }
 0x605   :  { %v1367_v8 = vmul.f32 %v1505_v6, %v1357_v7  ;;  %v1368_v9 = vmul.f32 %v1505_v6, %v1358_v56  ;;  %v1369_v10 = vmul.f32 %v1505_v6, %v1359_v34  ;;  %v1370_v1 = vmul.f32 %v1505_v6, %v1360_v63 }
 0x607   :  { %v1377_v11 = vadd.f32 %v1506_v19, %v1367_v8  ;;  %v1378_v2 = vadd.f32 %v1506_v19, %v1368_v9  ;;  %v1379_v12 = vadd.f32 %v1506_v19, %v1369_v10  ;;  %v1380_v60 = vadd.f32 %v1506_v19, %v1370_v1 }
 0x609   :  { %v1381_v3 = vmax.f32 %v1377_v11, 0.0  ;;  %v1382_v13 = vmax.f32 %v1378_v2, 0.0  ;;  %v1383_v4 = vmax.f32 %v1379_v12, 0.0  ;;  %v1384_v14 = vmax.f32 %v1380_v60, 0.0 }
 0x60b   :  { %1385 = vst [vmem:[%s2543_s9] sm:$0xff] %v1381_v3  ;;  %1386 = vst [vmem:[%s2543_s9 + $0x8] sm:$0xff] %v1382_v13 }
 0x60c   :  { %1387 = vst [vmem:[%s2543_s9 + $0x10] sm:$0xff] %v1383_v4  ;;  %1388 = vst [vmem:[%s2543_s9 + $0x18] sm:$0xff] %v1384_v14 }

</bundles_post_ra>
